<compile_context>
chip_gen: v7x
topology: tpu7x:2x2x1
jax: 0.10.0
libtpu: 0.0.40
codegen_flags: <defaults>
</compile_context>

<pallas_src>
import functools

import jax
import jax.numpy as jnp
from jax import lax
from jax.experimental import pallas as pl
from jax.experimental.pallas import tpu as pltpu


def _encoder_block_kernel(xl_ref, xc_ref, xr_ref, w1_ref, w2_ref,
                          gamma_ref, beta_ref, o_ref, sum_ref, ssq_ref,
                          *, inv_count, eps):
    # xl/xc/xr: (C_in, LT) left / centre / right x tiles (lane-dense, f32)
    # w1: (3, C_h, C_in)   w2: (3, C_in, C_h)   gamma/beta: (C_h, 1)
    # o:  (C_in, LT)       sum/ssq: (C_h, 1) f32 VMEM scratch (persistent)
    phase = pl.program_id(0)
    n = pl.program_id(1)
    t = pl.program_id(2)
    last_t = pl.num_programs(2) - 1

    _, LT = xc_ref.shape
    xc = xc_ref[...]                                             # (C_in, LT)

    # 1-column halos for conv1 (zero only at the true sequence boundaries).
    xl_last = jnp.where(t > 0, xl_ref[:, LT - 1:LT], 0.0)        # x[:, start-1]
    xr_first = jnp.where(t < last_t, xr_ref[:, 0:1], 0.0)        # x[:, start+LT]
    x_prev = jnp.concatenate([xl_last, xc[:, :LT - 1]], axis=1)  # x[:, start+j-1]
    x_next = jnp.concatenate([xc[:, 1:], xr_first], axis=1)      # x[:, start+j+1]

    w1p, w1c, w1n = w1_ref[0], w1_ref[1], w1_ref[2]              # (C_h, C_in)
    h = (jnp.dot(w1p, x_prev, preferred_element_type=jnp.float32)
         + jnp.dot(w1c, xc, preferred_element_type=jnp.float32)
         + jnp.dot(w1n, x_next, preferred_element_type=jnp.float32))  # (C_h, LT)

    @pl.when((phase == 0) & (n == 0) & (t == 0))
    def _init_stats():
        sum_ref[...] = jnp.zeros_like(sum_ref)
        ssq_ref[...] = jnp.zeros_like(ssq_ref)

    @pl.when(phase == 0)
    def _accumulate_stats():
        sum_ref[...] += jnp.sum(h, axis=-1, keepdims=True)
        ssq_ref[...] += jnp.sum(h * h, axis=-1, keepdims=True)

    @pl.when(phase == 1)
    def _normalize_conv2_residual():
        # Global BN statistics (biased variance), folded into one FMA/element.
        mean = sum_ref[...] * inv_count                          # (C_h, 1)
        var = ssq_ref[...] * inv_count - mean * mean
        scale = lax.rsqrt(var + eps) * gamma_ref[...]            # (C_h, 1)
        shift = beta_ref[...] - mean * scale
        hn = jnp.maximum(h * scale + shift, 0.0)                 # BN + ReLU

        # hn halo columns for conv2, computed locally with the global stats.
        def conv1_col(xm1, x0, xp1):                             # (C_in,1) -> (C_h,1)
            return (jnp.dot(w1p, xm1, preferred_element_type=jnp.float32)
                    + jnp.dot(w1c, x0, preferred_element_type=jnp.float32)
                    + jnp.dot(w1n, xp1, preferred_element_type=jnp.float32))

        h_lh = conv1_col(xl_ref[:, LT - 2:LT - 1], xl_ref[:, LT - 1:LT],
                         xc[:, 0:1])
        h_rh = conv1_col(xc[:, LT - 1:LT], xr_ref[:, 0:1], xr_ref[:, 1:2])
        hn_lh = jnp.where(t > 0, jnp.maximum(h_lh * scale + shift, 0.0), 0.0)
        hn_rh = jnp.where(t < last_t,
                          jnp.maximum(h_rh * scale + shift, 0.0), 0.0)

        hn_prev = jnp.concatenate([hn_lh, hn[:, :LT - 1]], axis=1)
        hn_next = jnp.concatenate([hn[:, 1:], hn_rh], axis=1)

        w2p, w2c, w2n = w2_ref[0], w2_ref[1], w2_ref[2]          # (C_in, C_h)
        y = (jnp.dot(w2p, hn_prev, preferred_element_type=jnp.float32)
             + jnp.dot(w2c, hn, preferred_element_type=jnp.float32)
             + jnp.dot(w2n, hn_next, preferred_element_type=jnp.float32))
        o_ref[...] = (xc + y).astype(o_ref.dtype)                # residual


def encoder_block(x, w1, w2, gamma, beta, *, l_tile=128):
    """x: (N, C_in, L) f32; w1: (3, C_h, C_in); w2: (3, C_in, C_h);
    gamma, beta: (C_h, 1). Returns (N, C_in, L)."""
    N, C_in, L = x.shape
    C_h = w1.shape[1]
    if L % l_tile != 0:
        l_tile = L                      # single tile per batch element
    T = L // l_tile

    kernel = functools.partial(_encoder_block_kernel,
                               inv_count=1.0 / float(N * L), eps=1e-5)

    x_block = (None, C_in, l_tile)      # batch dim squeezed -> (C_in, LT) slab
    c_map = lambda p, n, t: (n, 0, t)
    l_map = lambda p, n, t: (n, 0, jnp.maximum(t - 1, 0))
    r_map = lambda p, n, t: (n, 0, jnp.minimum(t + 1, T - 1))
    # Phase 0 never writes the output; pin its block index so no spurious HBM
    # write-backs happen until phase 1 revisits each tile.
    o_map = lambda p, n, t: (jnp.where(p == 1, n, 0), 0, jnp.where(p == 1, t, 0))

    return pl.pallas_call(
        kernel,
        out_shape=jax.ShapeDtypeStruct((N, C_in, L), x.dtype),
        grid=(2, N, T),
        in_specs=[
            pl.BlockSpec(x_block, l_map),                         # left halo tile
            pl.BlockSpec(x_block, c_map),                         # centre tile
            pl.BlockSpec(x_block, r_map),                         # right halo tile
            pl.BlockSpec((3, C_h, C_in), lambda p, n, t: (0, 0, 0)),
            pl.BlockSpec((3, C_in, C_h), lambda p, n, t: (0, 0, 0)),
            pl.BlockSpec((C_h, 1), lambda p, n, t: (0, 0)),
            pl.BlockSpec((C_h, 1), lambda p, n, t: (0, 0)),
        ],
        out_specs=pl.BlockSpec(x_block, o_map),
        scratch_shapes=[pltpu.VMEM((C_h, 1), jnp.float32),        # sum(h)
                        pltpu.VMEM((C_h, 1), jnp.float32)],       # sum(h*h)
        compiler_params=pltpu.CompilerParams(
            # Phase axis is ordered and BN stats accumulate across (N, tile),
            # so all axes stay "arbitrary" (see per-core TODO above).
            dimension_semantics=("arbitrary", "arbitrary", "arbitrary"),
            vmem_limit_bytes=48 * 1024 * 1024),
    )(x, x, x, w1, w2, gamma, beta)


def ref_forward(x, w1, w2, gamma, beta):
    """Pure-JAX reference mirroring the PyTorch module (training-mode BN)."""
    w1_oik = jnp.transpose(w1, (1, 2, 0))   # (C_h, C_in, 3)
    w2_oik = jnp.transpose(w2, (1, 2, 0))   # (C_in, C_h, 3)
    dn = ('NCH', 'OIH', 'NCH')
    h = lax.conv_general_dilated(x, w1_oik, window_strides=(1,),
                                 padding=((1, 1),), dimension_numbers=dn)
    mean = jnp.mean(h, axis=(0, 2), keepdims=True)
    var = jnp.mean((h - mean) ** 2, axis=(0, 2), keepdims=True)
    hn = (h - mean) / jnp.sqrt(var + 1e-5)
    hn = hn * gamma.reshape(1, -1, 1) + beta.reshape(1, -1, 1)
    hn = jnp.maximum(hn, 0.0)
    y = lax.conv_general_dilated(hn, w2_oik, window_strides=(1,),
                                 padding=((1, 1),), dimension_numbers=dn)
    return x + y


if __name__ == "__main__":
    # Small shapes consistent with the module; L = 2 tiles of 128 so the
    # cross-tile halo path and both sequence boundaries are exercised.
    N, C_IN, C_H, L = 2, 8, 16, 256
    key = jax.random.PRNGKey(0)
    kx, kw1, kw2, kg, kb = jax.random.split(key, 5)

    x = jax.random.normal(kx, (N, C_IN, L), dtype=jnp.float32)
    w1 = jax.random.normal(kw1, (3, C_H, C_IN), dtype=jnp.float32)
    w1 = w1 * (1.0 / (3 * C_IN) ** 0.5)
    w2 = jax.random.normal(kw2, (3, C_IN, C_H), dtype=jnp.float32)
    w2 = w2 * (1.0 / (3 * C_H) ** 0.5)
    # Non-trivial BN affine params to exercise the gamma/beta path.
    gamma = 1.0 + 0.1 * jax.random.normal(kg, (C_H, 1), dtype=jnp.float32)
    beta = 0.1 * jax.random.normal(kb, (C_H, 1), dtype=jnp.float32)

    out = jax.block_until_ready(encoder_block(x, w1, w2, gamma, beta))
    ref = jax.block_until_ready(ref_forward(x, w1, w2, gamma, beta))

    assert out.shape == x.shape and out.dtype == x.dtype
    max_err = float(jnp.max(jnp.abs(out - ref)))
    # The slack exists only to tolerate XLA's default bf16 MXU passes for the
    # f32 reference / interpret path; when precisions match the error is ~1e-5.
    assert max_err < 5e-2, max_err
    print("KERNEL_OK")
</pallas_src>

<mosaic_0001>
module attributes {stable_mosaic.version = 11 : i64} {
  func.func @_encoder_block_kernel(%arg0: i32, %arg1: i32, %arg2: i32, %arg3: memref<1x8x128xf32, #tpu.memory_space<vmem>>, %arg4: memref<1x8x128xf32, #tpu.memory_space<vmem>>, %arg5: memref<1x8x128xf32, #tpu.memory_space<vmem>>, %arg6: memref<3x16x8xf32, #tpu.memory_space<vmem>>, %arg7: memref<3x8x16xf32, #tpu.memory_space<vmem>>, %arg8: memref<16x1xf32, #tpu.memory_space<vmem>>, %arg9: memref<16x1xf32, #tpu.memory_space<vmem>>, %arg10: memref<1x8x128xf32, #tpu.memory_space<vmem>>, %arg11: memref<16x1xf32, #tpu.memory_space<vmem>>, %arg12: memref<16x1xf32, #tpu.memory_space<vmem>>) attributes {dimension_semantics = [#tpu.dimension_semantics<arbitrary>, #tpu.dimension_semantics<arbitrary>, #tpu.dimension_semantics<arbitrary>], iteration_bounds = array<i64: 2, 2, 2>, scalar_prefetch = 0 : i64, scratch_operands = 2 : i64, tpu.core_type = #tpu.core_type<tc>, window_params = [{transform_indices = @transform_0, window_bounds = array<i64: 1, 8, 128>}, {transform_indices = @transform_1, window_bounds = array<i64: 1, 8, 128>}, {transform_indices = @transform_2, window_bounds = array<i64: 1, 8, 128>}, {pipeline_mode = #tpu.pipeline_mode<synchronous>, transform_indices = @transform_3, window_bounds = array<i64: 3, 16, 8>}, {pipeline_mode = #tpu.pipeline_mode<synchronous>, transform_indices = @transform_4, window_bounds = array<i64: 3, 8, 16>}, {pipeline_mode = #tpu.pipeline_mode<synchronous>, transform_indices = @transform_5, window_bounds = array<i64: 16, 1>}, {pipeline_mode = #tpu.pipeline_mode<synchronous>, transform_indices = @transform_6, window_bounds = array<i64: 16, 1>}, {transform_indices = @transform_7, window_bounds = array<i64: 1, 8, 128>}]} {
    %c0 = arith.constant 0 : index
    %c0_0 = arith.constant 0 : index
    %c0_1 = arith.constant 0 : index
    %0 = vector.load %arg4[%c0, %c0_0, %c0_1] : memref<1x8x128xf32, #tpu.memory_space<vmem>>, vector<1x8x128xf32>
    %1 = vector.shape_cast %0 : vector<1x8x128xf32> to vector<8x128xf32>
    %c0_i32 = arith.constant 0 : i32
    %2 = arith.cmpi sgt, %arg2, %c0_i32 : i32
    %c0_2 = arith.constant 0 : index
    %c0_3 = arith.constant 0 : index
    %c127 = arith.constant 127 : index
    %3 = vector.load %arg3[%c0_2, %c0_3, %c127] : memref<1x8x128xf32, #tpu.memory_space<vmem>>, vector<1x8x1xf32>
    %4 = vector.shape_cast %3 : vector<1x8x1xf32> to vector<8x1xf32>
    %cst = arith.constant 0.000000e+00 : f32
    %5 = vector.broadcast %cst : f32 to vector<8x1xf32>
    %6 = arith.select %2, %4, %5 : vector<8x1xf32>
    %c1_i32 = arith.constant 1 : i32
    %7 = arith.cmpi slt, %arg2, %c1_i32 : i32
    %c0_4 = arith.constant 0 : index
    %c0_5 = arith.constant 0 : index
    %c0_6 = arith.constant 0 : index
    %8 = vector.load %arg5[%c0_4, %c0_5, %c0_6] : memref<1x8x128xf32, #tpu.memory_space<vmem>>, vector<1x8x1xf32>
    %9 = vector.shape_cast %8 : vector<1x8x1xf32> to vector<8x1xf32>
    %cst_7 = arith.constant 0.000000e+00 : f32
    %10 = vector.broadcast %cst_7 : f32 to vector<8x1xf32>
    %11 = arith.select %7, %9, %10 : vector<8x1xf32>
    %12 = vector.extract_strided_slice %1 {offsets = [0, 0], sizes = [8, 127], strides = [1, 1]} : vector<8x128xf32> to vector<8x127xf32>
    %13 = tpu.concatenate %6, %12 in 1 : vector<8x1xf32>, vector<8x127xf32> -> vector<8x128xf32>
    %14 = vector.extract_strided_slice %1 {offsets = [0, 1], sizes = [8, 127], strides = [1, 1]} : vector<8x128xf32> to vector<8x127xf32>
    %15 = tpu.concatenate %14, %11 in 1 : vector<8x127xf32>, vector<8x1xf32> -> vector<8x128xf32>
    %c0_8 = arith.constant 0 : index
    %c0_9 = arith.constant 0 : index
    %c0_10 = arith.constant 0 : index
    %16 = vector.load %arg6[%c0_8, %c0_9, %c0_10] : memref<3x16x8xf32, #tpu.memory_space<vmem>>, vector<1x16x8xf32>
    %17 = vector.shape_cast %16 : vector<1x16x8xf32> to vector<16x8xf32>
    %c1 = arith.constant 1 : index
    %c0_11 = arith.constant 0 : index
    %c0_12 = arith.constant 0 : index
    %18 = vector.load %arg6[%c1, %c0_11, %c0_12] : memref<3x16x8xf32, #tpu.memory_space<vmem>>, vector<1x16x8xf32>
    %19 = vector.shape_cast %18 : vector<1x16x8xf32> to vector<16x8xf32>
    %c2 = arith.constant 2 : index
    %c0_13 = arith.constant 0 : index
    %c0_14 = arith.constant 0 : index
    %20 = vector.load %arg6[%c2, %c0_13, %c0_14] : memref<3x16x8xf32, #tpu.memory_space<vmem>>, vector<1x16x8xf32>
    %21 = vector.shape_cast %20 : vector<1x16x8xf32> to vector<16x8xf32>
    %cst_15 = arith.constant dense<0.000000e+00> : vector<16x128xf32>
    %22 = tpu.matmul %17, %13, %cst_15 {dimension_numbers = #tpu.dot_dimension_numbers<[1], [0], [0], [1], [0, 0, 1, 1], [], []>} : vector<16x8xf32>, vector<8x128xf32>, vector<16x128xf32> -> vector<16x128xf32>
    %cst_16 = arith.constant dense<0.000000e+00> : vector<16x128xf32>
    %23 = tpu.matmul %19, %1, %cst_16 {dimension_numbers = #tpu.dot_dimension_numbers<[1], [0], [0], [1], [0, 0, 1, 1], [], []>} : vector<16x8xf32>, vector<8x128xf32>, vector<16x128xf32> -> vector<16x128xf32>
    %24 = arith.addf %22, %23 : vector<16x128xf32>
    %cst_17 = arith.constant dense<0.000000e+00> : vector<16x128xf32>
    %25 = tpu.matmul %21, %15, %cst_17 {dimension_numbers = #tpu.dot_dimension_numbers<[1], [0], [0], [1], [0, 0, 1, 1], [], []>} : vector<16x8xf32>, vector<8x128xf32>, vector<16x128xf32> -> vector<16x128xf32>
    %26 = arith.addf %24, %25 : vector<16x128xf32>
    %c0_i32_18 = arith.constant 0 : i32
    %27 = arith.cmpi eq, %arg0, %c0_i32_18 : i32
    %c0_i32_19 = arith.constant 0 : i32
    %28 = arith.cmpi eq, %arg1, %c0_i32_19 : i32
    %29 = arith.andi %27, %28 : i1
    %c0_i32_20 = arith.constant 0 : i32
    %30 = arith.cmpi eq, %arg2, %c0_i32_20 : i32
    %31 = arith.andi %29, %30 : i1
    %32 = arith.extui %31 : i1 to i32
    %c0_i32_21 = arith.constant 0 : i32
    %33 = arith.cmpi ne, %32, %c0_i32_21 : i32
    scf.if %33 {
      %cst_26 = arith.constant 0.000000e+00 : f32
      %40 = vector.broadcast %cst_26 : f32 to vector<16x1xf32>
      %c0_27 = arith.constant 0 : index
      %c0_28 = arith.constant 0 : index
      %41 = vector.load %arg11[%c0_27, %c0_28] : memref<16x1xf32, #tpu.memory_space<vmem>>, vector<16x1xf32>
      tpu.vector_store %arg11[%c0_27, %c0_28], %40 {strides = array<i32>} : memref<16x1xf32, #tpu.memory_space<vmem>>, vector<16x1xf32>,
      %cst_29 = arith.constant 0.000000e+00 : f32
      %42 = vector.broadcast %cst_29 : f32 to vector<16x1xf32>
      %c0_30 = arith.constant 0 : index
      %c0_31 = arith.constant 0 : index
      %43 = vector.load %arg12[%c0_30, %c0_31] : memref<16x1xf32, #tpu.memory_space<vmem>>, vector<16x1xf32>
      tpu.vector_store %arg12[%c0_30, %c0_31], %42 {strides = array<i32>} : memref<16x1xf32, #tpu.memory_space<vmem>>, vector<16x1xf32>,
    } else {
    }
    %c0_i32_22 = arith.constant 0 : i32
    %34 = arith.cmpi eq, %arg0, %c0_i32_22 : i32
    %35 = arith.extui %34 : i1 to i32
    %c0_i32_23 = arith.constant 0 : i32
    %36 = arith.cmpi ne, %35, %c0_i32_23 : i32
    scf.if %36 {
      %c0_26 = arith.constant 0 : index
      %c0_27 = arith.constant 0 : index
      %40 = vector.load %arg11[%c0_26, %c0_27] : memref<16x1xf32, #tpu.memory_space<vmem>>, vector<16x1xf32>
      %cst_28 = arith.constant dense<0.000000e+00> : vector<16xf32>
      %41 = vector.multi_reduction <add>, %26, %cst_28 [1] : vector<16x128xf32> to vector<16xf32>
      %42 = vector.shape_cast %41 : vector<16xf32> to vector<16x1xf32>
      %43 = arith.addf %40, %42 : vector<16x1xf32>
      %c0_29 = arith.constant 0 : index
      %c0_30 = arith.constant 0 : index
      %44 = vector.load %arg11[%c0_29, %c0_30] : memref<16x1xf32, #tpu.memory_space<vmem>>, vector<16x1xf32>
      tpu.vector_store %arg11[%c0_29, %c0_30], %43 {strides = array<i32>} : memref<16x1xf32, #tpu.memory_space<vmem>>, vector<16x1xf32>,
      %c0_31 = arith.constant 0 : index
      %c0_32 = arith.constant 0 : index
      %45 = vector.load %arg12[%c0_31, %c0_32] : memref<16x1xf32, #tpu.memory_space<vmem>>, vector<16x1xf32>
      %46 = arith.mulf %26, %26 : vector<16x128xf32>
      %cst_33 = arith.constant dense<0.000000e+00> : vector<16xf32>
      %47 = vector.multi_reduction <add>, %46, %cst_33 [1] : vector<16x128xf32> to vector<16xf32>
      %48 = vector.shape_cast %47 : vector<16xf32> to vector<16x1xf32>
      %49 = arith.addf %45, %48 : vector<16x1xf32>
      %c0_34 = arith.constant 0 : index
      %c0_35 = arith.constant 0 : index
      %50 = vector.load %arg12[%c0_34, %c0_35] : memref<16x1xf32, #tpu.memory_space<vmem>>, vector<16x1xf32>
      tpu.vector_store %arg12[%c0_34, %c0_35], %49 {strides = array<i32>} : memref<16x1xf32, #tpu.memory_space<vmem>>, vector<16x1xf32>,
    } else {
    }
    %c1_i32_24 = arith.constant 1 : i32
    %37 = arith.cmpi eq, %arg0, %c1_i32_24 : i32
    %38 = arith.extui %37 : i1 to i32
    %c0_i32_25 = arith.constant 0 : i32
    %39 = arith.cmpi ne, %38, %c0_i32_25 : i32
    scf.if %39 {
      %c0_26 = arith.constant 0 : index
      %c0_27 = arith.constant 0 : index
      %40 = vector.load %arg11[%c0_26, %c0_27] : memref<16x1xf32, #tpu.memory_space<vmem>>, vector<16x1xf32>
      %cst_28 = arith.constant 0.001953125 : f32
      %41 = vector.broadcast %cst_28 : f32 to vector<16x1xf32>
      %42 = arith.mulf %40, %41 : vector<16x1xf32>
      %c0_29 = arith.constant 0 : index
      %c0_30 = arith.constant 0 : index
      %43 = vector.load %arg12[%c0_29, %c0_30] : memref<16x1xf32, #tpu.memory_space<vmem>>, vector<16x1xf32>
      %cst_31 = arith.constant 0.001953125 : f32
      %44 = vector.broadcast %cst_31 : f32 to vector<16x1xf32>
      %45 = arith.mulf %43, %44 : vector<16x1xf32>
      %46 = arith.mulf %42, %42 : vector<16x1xf32>
      %47 = arith.subf %45, %46 : vector<16x1xf32>
      %cst_32 = arith.constant 9.99999974E-6 : f32
      %48 = vector.broadcast %cst_32 : f32 to vector<16x1xf32>
      %49 = arith.addf %47, %48 : vector<16x1xf32>
      %50 = math.rsqrt %49 : vector<16x1xf32>
      %c0_33 = arith.constant 0 : index
      %c0_34 = arith.constant 0 : index
      %51 = vector.load %arg8[%c0_33, %c0_34] : memref<16x1xf32, #tpu.memory_space<vmem>>, vector<16x1xf32>
      %52 = arith.mulf %50, %51 : vector<16x1xf32>
      %c0_35 = arith.constant 0 : index
      %c0_36 = arith.constant 0 : index
      %53 = vector.load %arg9[%c0_35, %c0_36] : memref<16x1xf32, #tpu.memory_space<vmem>>, vector<16x1xf32>
      %54 = arith.mulf %42, %52 : vector<16x1xf32>
      %55 = arith.subf %53, %54 : vector<16x1xf32>
      %56 = vector.broadcast %52 : vector<16x1xf32> to vector<16x128xf32>
      %57 = arith.mulf %26, %56 : vector<16x128xf32>
      %58 = vector.broadcast %55 : vector<16x1xf32> to vector<16x128xf32>
      %59 = arith.addf %57, %58 : vector<16x128xf32>
      %cst_37 = arith.constant 0.000000e+00 : f32
      %60 = vector.broadcast %cst_37 : f32 to vector<16x128xf32>
      %61 = arith.maximumf %59, %60 : vector<16x128xf32>
      %c0_38 = arith.constant 0 : index
      %c0_39 = arith.constant 0 : index
      %c126 = arith.constant 126 : index
      %62 = vector.load %arg3[%c0_38, %c0_39, %c126] : memref<1x8x128xf32, #tpu.memory_space<vmem>>, vector<1x8x1xf32>
      %63 = vector.shape_cast %62 : vector<1x8x1xf32> to vector<8x1xf32>
      %c0_40 = arith.constant 0 : index
      %c0_41 = arith.constant 0 : index
      %c127_42 = arith.constant 127 : index
      %64 = vector.load %arg3[%c0_40, %c0_41, %c127_42] : memref<1x8x128xf32, #tpu.memory_space<vmem>>, vector<1x8x1xf32>
      %65 = vector.shape_cast %64 : vector<1x8x1xf32> to vector<8x1xf32>
      %66 = vector.extract_strided_slice %1 {offsets = [0, 0], sizes = [8, 1], strides = [1, 1]} : vector<8x128xf32> to vector<8x1xf32>
      %cst_43 = arith.constant dense<0.000000e+00> : vector<16x1xf32>
      %67 = tpu.matmul %17, %63, %cst_43 {dimension_numbers = #tpu.dot_dimension_numbers<[1], [0], [0], [1], [0, 0, 1, 1], [], []>} : vector<16x8xf32>, vector<8x1xf32>, vector<16x1xf32> -> vector<16x1xf32>
      %cst_44 = arith.constant dense<0.000000e+00> : vector<16x1xf32>
      %68 = tpu.matmul %19, %65, %cst_44 {dimension_numbers = #tpu.dot_dimension_numbers<[1], [0], [0], [1], [0, 0, 1, 1], [], []>} : vector<16x8xf32>, vector<8x1xf32>, vector<16x1xf32> -> vector<16x1xf32>
      %69 = arith.addf %67, %68 : vector<16x1xf32>
      %cst_45 = arith.constant dense<0.000000e+00> : vector<16x1xf32>
      %70 = tpu.matmul %21, %66, %cst_45 {dimension_numbers = #tpu.dot_dimension_numbers<[1], [0], [0], [1], [0, 0, 1, 1], [], []>} : vector<16x8xf32>, vector<8x1xf32>, vector<16x1xf32> -> vector<16x1xf32>
      %71 = arith.addf %69, %70 : vector<16x1xf32>
      %72 = vector.extract_strided_slice %1 {offsets = [0, 127], sizes = [8, 1], strides = [1, 1]} : vector<8x128xf32> to vector<8x1xf32>
      %c0_46 = arith.constant 0 : index
      %c0_47 = arith.constant 0 : index
      %c0_48 = arith.constant 0 : index
      %73 = vector.load %arg5[%c0_46, %c0_47, %c0_48] : memref<1x8x128xf32, #tpu.memory_space<vmem>>, vector<1x8x1xf32>
      %74 = vector.shape_cast %73 : vector<1x8x1xf32> to vector<8x1xf32>
      %c0_49 = arith.constant 0 : index
      %c0_50 = arith.constant 0 : index
      %c1_51 = arith.constant 1 : index
      %75 = vector.load %arg5[%c0_49, %c0_50, %c1_51] : memref<1x8x128xf32, #tpu.memory_space<vmem>>, vector<1x8x1xf32>
      %76 = vector.shape_cast %75 : vector<1x8x1xf32> to vector<8x1xf32>
      %cst_52 = arith.constant dense<0.000000e+00> : vector<16x1xf32>
      %77 = tpu.matmul %17, %72, %cst_52 {dimension_numbers = #tpu.dot_dimension_numbers<[1], [0], [0], [1], [0, 0, 1, 1], [], []>} : vector<16x8xf32>, vector<8x1xf32>, vector<16x1xf32> -> vector<16x1xf32>
      %cst_53 = arith.constant dense<0.000000e+00> : vector<16x1xf32>
      %78 = tpu.matmul %19, %74, %cst_53 {dimension_numbers = #tpu.dot_dimension_numbers<[1], [0], [0], [1], [0, 0, 1, 1], [], []>} : vector<16x8xf32>, vector<8x1xf32>, vector<16x1xf32> -> vector<16x1xf32>
      %79 = arith.addf %77, %78 : vector<16x1xf32>
      %cst_54 = arith.constant dense<0.000000e+00> : vector<16x1xf32>
      %80 = tpu.matmul %21, %76, %cst_54 {dimension_numbers = #tpu.dot_dimension_numbers<[1], [0], [0], [1], [0, 0, 1, 1], [], []>} : vector<16x8xf32>, vector<8x1xf32>, vector<16x1xf32> -> vector<16x1xf32>
      %81 = arith.addf %79, %80 : vector<16x1xf32>
      %c0_i32_55 = arith.constant 0 : i32
      %82 = arith.cmpi sgt, %arg2, %c0_i32_55 : i32
      %83 = arith.mulf %71, %52 : vector<16x1xf32>
      %84 = arith.addf %83, %55 : vector<16x1xf32>
      %cst_56 = arith.constant 0.000000e+00 : f32
      %85 = vector.broadcast %cst_56 : f32 to vector<16x1xf32>
      %86 = arith.maximumf %84, %85 : vector<16x1xf32>
      %cst_57 = arith.constant 0.000000e+00 : f32
      %87 = vector.broadcast %cst_57 : f32 to vector<16x1xf32>
      %88 = arith.select %82, %86, %87 : vector<16x1xf32>
      %c1_i32_58 = arith.constant 1 : i32
      %89 = arith.cmpi slt, %arg2, %c1_i32_58 : i32
      %90 = arith.mulf %81, %52 : vector<16x1xf32>
      %91 = arith.addf %90, %55 : vector<16x1xf32>
      %cst_59 = arith.constant 0.000000e+00 : f32
      %92 = vector.broadcast %cst_59 : f32 to vector<16x1xf32>
      %93 = arith.maximumf %91, %92 : vector<16x1xf32>
      %cst_60 = arith.constant 0.000000e+00 : f32
      %94 = vector.broadcast %cst_60 : f32 to vector<16x1xf32>
      %95 = arith.select %89, %93, %94 : vector<16x1xf32>
      %96 = vector.extract_strided_slice %61 {offsets = [0, 0], sizes = [16, 127], strides = [1, 1]} : vector<16x128xf32> to vector<16x127xf32>
      %97 = tpu.concatenate %88, %96 in 1 : vector<16x1xf32>, vector<16x127xf32> -> vector<16x128xf32>
      %98 = vector.extract_strided_slice %61 {offsets = [0, 1], sizes = [16, 127], strides = [1, 1]} : vector<16x128xf32> to vector<16x127xf32>
      %99 = tpu.concatenate %98, %95 in 1 : vector<16x127xf32>, vector<16x1xf32> -> vector<16x128xf32>
      %c0_61 = arith.constant 0 : index
      %c0_62 = arith.constant 0 : index
      %c0_63 = arith.constant 0 : index
      %100 = vector.load %arg7[%c0_61, %c0_62, %c0_63] : memref<3x8x16xf32, #tpu.memory_space<vmem>>, vector<1x8x16xf32>
      %101 = vector.shape_cast %100 : vector<1x8x16xf32> to vector<8x16xf32>
      %c1_64 = arith.constant 1 : index
      %c0_65 = arith.constant 0 : index
      %c0_66 = arith.constant 0 : index
      %102 = vector.load %arg7[%c1_64, %c0_65, %c0_66] : memref<3x8x16xf32, #tpu.memory_space<vmem>>, vector<1x8x16xf32>
      %103 = vector.shape_cast %102 : vector<1x8x16xf32> to vector<8x16xf32>
      %c2_67 = arith.constant 2 : index
      %c0_68 = arith.constant 0 : index
      %c0_69 = arith.constant 0 : index
      %104 = vector.load %arg7[%c2_67, %c0_68, %c0_69] : memref<3x8x16xf32, #tpu.memory_space<vmem>>, vector<1x8x16xf32>
      %105 = vector.shape_cast %104 : vector<1x8x16xf32> to vector<8x16xf32>
      %cst_70 = arith.constant dense<0.000000e+00> : vector<8x128xf32>
      %106 = tpu.matmul %101, %97, %cst_70 {dimension_numbers = #tpu.dot_dimension_numbers<[1], [0], [0], [1], [0, 0, 1, 1], [], []>} : vector<8x16xf32>, vector<16x128xf32>, vector<8x128xf32> -> vector<8x128xf32>
      %cst_71 = arith.constant dense<0.000000e+00> : vector<8x128xf32>
      %107 = tpu.matmul %103, %61, %cst_71 {dimension_numbers = #tpu.dot_dimension_numbers<[1], [0], [0], [1], [0, 0, 1, 1], [], []>} : vector<8x16xf32>, vector<16x128xf32>, vector<8x128xf32> -> vector<8x128xf32>
      %108 = arith.addf %106, %107 : vector<8x128xf32>
      %cst_72 = arith.constant dense<0.000000e+00> : vector<8x128xf32>
      %109 = tpu.matmul %105, %99, %cst_72 {dimension_numbers = #tpu.dot_dimension_numbers<[1], [0], [0], [1], [0, 0, 1, 1], [], []>} : vector<8x16xf32>, vector<16x128xf32>, vector<8x128xf32> -> vector<8x128xf32>
      %110 = arith.addf %108, %109 : vector<8x128xf32>
      %111 = arith.addf %1, %110 : vector<8x128xf32>
      %c0_73 = arith.constant 0 : index
      %c0_74 = arith.constant 0 : index
      %c0_75 = arith.constant 0 : index
      %112 = vector.load %arg10[%c0_73, %c0_74, %c0_75] : memref<1x8x128xf32, #tpu.memory_space<vmem>>, vector<1x8x128xf32>
      %113 = vector.shape_cast %112 : vector<1x8x128xf32> to vector<8x128xf32>
      %114 = vector.shape_cast %111 : vector<8x128xf32> to vector<1x8x128xf32>
      tpu.vector_store %arg10[%c0_73, %c0_74, %c0_75], %114 {strides = array<i32>} : memref<1x8x128xf32, #tpu.memory_space<vmem>>, vector<1x8x128xf32>,
    } else {
    }
    return
  }
  func.func @transform_0(%arg0: i32, %arg1: i32, %arg2: i32) -> (i32, i32, i32) {
    %c1_i32 = arith.constant 1 : i32
    %0 = arith.subi %arg2, %c1_i32 : i32
    %c0_i32 = arith.constant 0 : i32
    %1 = arith.maxsi %0, %c0_i32 : i32
    %c0_i32_0 = arith.constant 0 : i32
    %c0_i32_1 = arith.constant 0 : i32
    return %arg1, %c0_i32_0, %1 : i32, i32, i32
  }
  func.func @transform_1(%arg0: i32, %arg1: i32, %arg2: i32) -> (i32, i32, i32) {
    %c0_i32 = arith.constant 0 : i32
    %c0_i32_0 = arith.constant 0 : i32
    return %arg1, %c0_i32, %arg2 : i32, i32, i32
  }
  func.func @transform_2(%arg0: i32, %arg1: i32, %arg2: i32) -> (i32, i32, i32) {
    %c1_i32 = arith.constant 1 : i32
    %0 = arith.addi %arg2, %c1_i32 : i32
    %c1_i32_0 = arith.constant 1 : i32
    %1 = arith.minsi %0, %c1_i32_0 : i32
    %c0_i32 = arith.constant 0 : i32
    %c0_i32_1 = arith.constant 0 : i32
    return %arg1, %c0_i32, %1 : i32, i32, i32
  }
  func.func @transform_3(%arg0: i32, %arg1: i32, %arg2: i32) -> (i32, i32, i32) {
    %c0_i32 = arith.constant 0 : i32
    %c0_i32_0 = arith.constant 0 : i32
    %c0_i32_1 = arith.constant 0 : i32
    %c0_i32_2 = arith.constant 0 : i32
    return %c0_i32, %c0_i32_0, %c0_i32_1 : i32, i32, i32
  }
  func.func @transform_4(%arg0: i32, %arg1: i32, %arg2: i32) -> (i32, i32, i32) {
    %c0_i32 = arith.constant 0 : i32
    %c0_i32_0 = arith.constant 0 : i32
    %c0_i32_1 = arith.constant 0 : i32
    %c0_i32_2 = arith.constant 0 : i32
    return %c0_i32, %c0_i32_0, %c0_i32_1 : i32, i32, i32
  }
  func.func @transform_5(%arg0: i32, %arg1: i32, %arg2: i32) -> (i32, i32) {
    %c0_i32 = arith.constant 0 : i32
    %c0_i32_0 = arith.constant 0 : i32
    %c0_i32_1 = arith.constant 0 : i32
    return %c0_i32, %c0_i32_0 : i32, i32
  }
  func.func @transform_6(%arg0: i32, %arg1: i32, %arg2: i32) -> (i32, i32) {
    %c0_i32 = arith.constant 0 : i32
    %c0_i32_0 = arith.constant 0 : i32
    %c0_i32_1 = arith.constant 0 : i32
    return %c0_i32, %c0_i32_0 : i32, i32
  }
  func.func @transform_7(%arg0: i32, %arg1: i32, %arg2: i32) -> (i32, i32, i32) {
    %c1_i32 = arith.constant 1 : i32
    %0 = arith.cmpi eq, %arg0, %c1_i32 : i32
    %c0_i32 = arith.constant 0 : i32
    %1 = arith.select %0, %arg1, %c0_i32 : i32
    %c1_i32_0 = arith.constant 1 : i32
    %2 = arith.cmpi eq, %arg0, %c1_i32_0 : i32
    %c0_i32_1 = arith.constant 0 : i32
    %3 = arith.select %2, %arg2, %c0_i32_1 : i32
    %c0_i32_2 = arith.constant 0 : i32
    %c0_i32_3 = arith.constant 0 : i32
    return %1, %c0_i32_2, %3 : i32, i32, i32
  }
}

</mosaic_0001>

<bundles_post_ra>
// kernel: tpu_custom_call.1
= control target key start
LH: loop header
LB: loop body
LE: loop exit
PB: predicated region body
PF: predicated region fallthrough
CT: control target
= control target key end

     0   :  { %s2531_s0 = inlined_call_operand.vmem [shape: f32[2,8,256], index: 0, kind: input, shape index: {}]   ;;  %s2532_s1 = inlined_call_operand.vmem [shape: f32[2,8,256], index: 1, kind: input, shape index: {}]   ;;  %s2533_s2 = inlined_call_operand.vmem [shape: f32[2,8,256], index: 2, kind: input, shape index: {}]   ;;  %s2534_s3 = inlined_call_operand.vmem [shape: f32[3,16,8], index: 3, kind: input, shape index: {}]   ;;  %s2535_s4 = inlined_call_operand.vmem [shape: f32[3,8,16], index: 4, kind: input, shape index: {}]   ;;  %s2536_s5 = inlined_call_operand.vmem [shape: f32[16,1], index: 5, kind: input, shape index: {}]   ;;  %s2537_s6 = inlined_call_operand.vmem [shape: f32[16,1], index: 6, kind: input, shape index: {}]   ;;  %s2538_s7 = inlined_call_operand.hbm [shape: f32[2,8,256], index: 7, kind: output, shape index: {}]  }
   0x1   :  { %2545 = sst [smem:[#allocation12_spill]] %s2532_s1 }
   0x2   :  { %12 = vsyncpa [#allocation5], 0 }
   0x3   :  { %14 = vsyncpa [#allocation5 + $0x1], 0  ;;  %s2147_s24 = smov 0   ;;  %s2149_s25 = smov 0  }
   0x4   :  { %s2151_s26 = smov 0   ;;  %s2153_s27 = smov 0  }
   0x5   :  { %s2155_s28 = smov 0   ;;  %s2157_s29 = smov 0  }
   0x6   :  { %s2159_s30 = smov 0   ;;  %s2161_s8 = smov 0  }
   0x7   :  { %s2163_s9 = smov 0   ;;  %s2165_s10 = smov 0  }
   0x8 LB: > { %2546 = sst [smem:[#allocation7_spill]] %s2086_s8  ;;  %s1678_s11 = sadd.s32 4294967295, %s2094_s10   ;;  %s2094_s10 = sphi %s2165_s10, %s20_s10   ;;  %s2090_s9 = sphi %s2163_s9, %s2570_s9   ;;  %s2086_s8 = sphi %s2161_s8, %s2563_s8   ;;  %s2082_s30 = sphi %s2159_s30, %s2569_s30   ;;  %s2078_s29 = sphi %s2157_s29, %s2561_s29   ;;  %s2074_s28 = sphi %s2155_s28, %s2560_s28   ;;  %s2070_s27 = sphi %s2153_s27, %s2568_s27   ;;  %s2066_s26 = sphi %s2151_s26, %s2567_s26   ;;  %s2062_s25 = sphi %s2149_s25, %s2566_s25   ;;  %s2058_s24 = sphi %s2147_s24, %s2565_s24  }
   0x9   : > { %2547 = sst [smem:[#allocation8_spill]] %s2090_s9  ;;  %s1679_s12 = sadd.s32 4294967294, %s2094_s10  }
   0xa   : > { %s32_s13 = sadd.s32 1, %s2082_s30  ;;  %s35_s14 = sadd.s32 1, %s2086_s8 }
   0xb   : > { %p33_p0 = scmp.ge.s32.totalorder %s32_s13, 2  ;;  %s39_s15 = sadd.s32 1, %s2090_s9 }
   0xc   : > { %p223_p1 = scmp.eq.s32.totalorder %s2090_s9, 1  ;;  %p244_p3 = scmp.ne.s32.totalorder %s2066_s26, %s2062_s25 }
   0xd   : > { %s2572_s13 = smov (%p33_p0, %s32_s13), 0  ;;  %s2574_s14 = smov (!%p33_p0, %s35_s14), %s2086_s8 }
   0xe   : > { %2548 = sst [smem:[#allocation9_spill]] %s2572_s13  ;;  %p37_p2 = scmp.ge.s32.totalorder %s2574_s14, 2 }
   0xf   : > { %s224_s16 = scalar_select %p223_p1, %s2086_s8, 0 }
  0x10   : > { %s225_s17 = scalar_select %p223_p1, %s2082_s30, 0 }
  0x11   : > { %s2576_s14 = smov (%p37_p2, %s2574_s14), 0  ;;  %s2578_s15 = smov (!%p37_p2, %s39_s15), %s2090_s9 }
  0x12   : > { %2549 = sst [smem:[#allocation10_spill]] %s2576_s14  ;;  %p245_p4 = scmp.eq.s32.totalorder %s1678_s11, 7 }
  0x13   : > { %p250_p5 = scmp.ne.s32.totalorder %s2062_s25, %s2058_s24  ;;  %p41_p6 = scmp.ge.s32.totalorder %s2578_s15, 2 }
  0x14   : > { %p251_p7 = scmp.eq.s32.totalorder %s1679_s12, 7  ;;  %p2215_p8 = por %p245_p4, %p244_p3 }
  0x15   : > { %p1684_p9 = scmp.ge.s32.totalorder %s2094_s10, 1  ;;  %s2580_s15 = smov (%p41_p6, %s2578_s15), 0 }
  0x16   : > { %2551 = sst [smem:[#allocation11_spill]] %s2580_s15  ;;  %p2222_p10 = por %p251_p7, %p250_p5 }
  0x17   : > { %p326_p11 = scmp.lt.s32.totalorder %s2094_s10, 9  ;;  %p226_p12 = scmp.eq.s32.totalorder %s2580_s15, 1 }
  0x18   : > { %s234_s12 = sadd.s32 1, %s2066_s26 }
  0x19   : > { %p327_p13 = pnand %p1684_p9, %p326_p11 }
  0x1a   : > { %s227_s20 = scalar_select %p226_p12, %s2576_s14, 0 }
  0x1b   : > { %s228_s21 = scalar_select %p226_p12, %s2572_s13, 0 }
  0x1c   : > { %s229_s22 = ssub.s32 %s224_s16, %s227_s20  ;;  %330 = sbr.rel (%p327_p13) target bundleno = 1252 (0x4e4), region = 48  ;;  %v2260_v2 = vld [vmem:[%s2534_s3] sm:$0xff] (!%p327_p13)  ;;  %vm462_vm0 = vcmask (!%p327_p13), 64512   ;;  %v2283_v4 = vld [vmem:[%s2534_s3 + $0x10] sm:$0xff] (!%p327_p13)  ;;  %v2288_v5 = vld [vmem:[%s2534_s3 + $0x18] sm:$0xff] (!%p327_p13)  ;;  %vm443_vm3 = vcmask (!%p327_p13), 7168  }
  0x1d   : > { %s230_s23 = ssub.s32 %s225_s17, %s228_s21  ;;  %p386_p1 = scmp.lt.s32.totalorder (!%p327_p13), %s2074_s28, 1  ;;  %1780 = vmatprep.mubr.msk.f32.mxu0 (!%p327_p13), %vm462_vm0, %v2260_v2  ;;  %1775 = vmatprep.mubr.msk.f32.mxu1 (!%p327_p13), %vm462_vm0, %v2283_v4  ;;  %v2328_v14 = vld [vmem:[%s2534_s3 + $0x8] sm:$0xff] (!%p327_p13)  ;;  %vm452_vm4 = vcmask (!%p327_p13), 1039360   ;;  %v2333_v15 = vld [vmem:[%s2534_s3 + $0x20] sm:$0xff] (!%p327_p13) }
  0x1e   : > { %s231_s11 = sor.u32 %s230_s23, %s229_s22  ;;  %p399_p2 = scmp.lt.s32.totalorder (!%p327_p13), %s2070_s27, 1  ;;  %v2343_v18 = vld [vmem:[%s2534_s3 + $0x28] sm:$0xff] (!%p327_p13) }
  0x1f   : > { %p232_p0 = scmp.eq.s32.totalorder %s231_s11, 0  ;;  %s1686_s15 = sadd.s32 (!%p327_p13), 4294967295, %s2070_s27 }
  0x20   : > { %p384_p3 = scmp.gt.s32.totalorder (!%p327_p13), %s1686_s15, 0  ;;  %p1687_p4 = scmp.lt.s32.totalorder (!%p327_p13), %s1686_s15, 1 }
  0x21   : > { %s2232_s9 = scalar_select %p232_p0, %s2066_s26, %s234_s12  }
  0x22   : > { %p423_p5 = scmp.gt.s32.totalorder (!%p327_p13), %s2070_s27, 0  ;;  %s2553_s1 = sld [smem:[#allocation12_spill]] (!%p327_p13) }
  0x23   : > { %s387_s14 = scalar_select %p386_p1, %s2074_s28, 1 }
  0x24   : > { %s400_s16 = scalar_select %p399_p2, %s2070_s27, 1 }
  0x25   : > { %s2241_s17 = sshll.u32 %s387_s14, 1  ;;  %s2582_s15 = smov (!%p384_p3, %s1686_s15), 0 }
  0x26   : > { %s402_s20 = sadd.s32 %s2241_s17, %s400_s16  ;;  %s2542_s12 = smov 127  }
  0x27   : > { %s1695_s21 = sshll.u32 %s402_s20, 3  ;;  %s2584_s15 = smov (!%p1687_p4, %s2582_s15), 1 }
  0x28   : > { %s404_s11 = scalar_lea.vmem %s2553_s1, %s1695_s21  ;;  %s405_s16 = sadd.s32 1, %s2070_s27 }
  0x29   : > { %v2248_v0 = vld [vmem:[%s404_s11] sm:$0xff]  ;;  %s425_s14 = scalar_select %p423_p5, 1, 0 }
  0x2a   : > { %445 = vrot.lane.b32.xlu1 %v2248_v0, %s2542_s12  ;;  %1773 = vmatprep.subr.mxu1 %v2248_v0  ;;  %s391_s22 = sadd.s32 %s2584_s15, %s2241_s17  ;;  %p2267_p6 = scmp.lt.s32.totalorder %s405_s16, 1 }
  0x2b   : > { %1774 = vmatpush3.msra.mxu1 %v2248_v0  ;;  %v426_v1 = vstv %s425_s14  ;;  %s1693_s11 = sshll.u32 %s391_s22, 3  ;;  %s2097_s1 = smov 1  }
  0x2c   : > { %vm2263_vm1 = vcmp.eq.s32.totalorder %v426_v1, 1  ;;  %s2276_s15 = scalar_lea.vmem %s2531_s0, %s1693_s11  ;;  %s2586_s16 = smov (!%p2267_p6, %s405_s16), 1  ;;  %1776 = vmatmul.mubr.msk.f32.vlgmr.msra.gmra.mrb[0].mxu1 %vm462_vm0, %v2288_v5 }
  0x2d   : > { %s1958_s21 = scalar_select %p423_p5, 255, 0 }
  0x2e   : > { %s431_s22 = scalar_select %p399_p2, 1, 0 }
  0x2f   : > { %v1959_v6 = vld [vmem:[%s2276_s15] sm:%s1958_s21]  ;;  %s2588_s16 = smov (!%p2267_p6, %s2586_s16), 1  ;;  %s380_s8 = sand.u32 1, %s2062_s25  }
  0x30   : > { %436 = vrot.lane.b32.xlu0 %v1959_v6, %s2097_s1  ;;  %v432_v7 = vstv %s431_s22  ;;  %s413_s13 = sadd.s32 %s2241_s17, %s2588_s16  ;;  %s2309_s12 = sshll.u32 %s380_s8, 3 }
  0x31   : > { %vm2303_vm2 = vcmp.eq.s32.totalorder %v432_v7, 1  ;;  %s1700_s11 = sshll.u32 %s413_s13, 3  ;;  %s2559_s17 = smov 127  }
  0x32   : > { %s2314_s21 = scalar_lea.vmem %s2533_s2, %s1700_s11  ;;  %p708_p7 = scmp.eq.s32.totalorder %s2078_s29, 0 }
  0x33   : > { %s1961_s23 = scalar_select %p399_p2, 255, 0 }
  0x34   : > { %440 = vrot.lane.b32.xlu0 %v2248_v0, %s2097_s1  ;;  %p709_p9 = scmp.eq.s32.totalorder %s2074_s28, 0  ;;  %p712_p13 = scmp.eq.s32.totalorder %s2070_s27, 0 }
  0x35   : > { %v1962_v9 = vld [vmem:[%s2314_s21] sm:%s1961_s23]  ;;  %s382_s20 = scalar_lea.vmem [#allocation4], %s2309_s12 }
  0x36   : > { %449 = vrot.lane.b32.xlu1 %v1962_v9, %s2559_s17  ;;  %p710_p11 = pnand %p709_p9, %p708_p7 }
  0x38   : > { %p711_p12 = pneg %p710_p11 }
  0x3a   : > { %p713_p0 = pnand %p712_p13, %p711_p12 }
  0x3b   : > { %v2098_v25 = vmov (!%p713_p0), 0.0  }
  0x3c   : > { %717 = vst.msk [vmem:[#allocation2] sm:$0xff] (!%p713_p0), %vm443_vm3, %v2098_v25  ;;  %718 = vst.msk [vmem:[#allocation2 + $0x8] sm:$0xff] (!%p713_p0), %vm443_vm3, %v2098_v25 }
  0x3d   : > { %719 = vst.msk [vmem:[#allocation3] sm:$0xff] (!%p713_p0), %vm443_vm3, %v2098_v25  ;;  %720 = vst.msk [vmem:[#allocation3 + $0x8] sm:$0xff] (!%p713_p0), %vm443_vm3, %v2098_v25 }
  0x9c   : > { %v446_v11 = vpop.permute.xlu1 %445 }
  0xa2   : > { %v437_v10 = vpop.permute.xlu0 %436 }
  0xa6   : > { %v2321_v12 = vpop.permute.xlu0 %440 }
  0xa7   : > { %v444_v13 = vsel %vm443_vm3, %v437_v10, %v2321_v12 }
  0xa8   : > { %1778 = vmatprep.subr.mxu0 %v444_v13  ;;  %v450_v16 = vpop.permute.xlu1 %449 }
  0xa9   : > { %1779 = vmatpush3.msra.mxu0 %v444_v13  ;;  %v453_v17 = vsel %vm452_vm4, %v446_v11, %v450_v16 }
  0xaa   : > { %1781 = vmatmul.mubr.msk.f32.vlgmr.msra.gmra.mrb[0].mxu0 %vm462_vm0, %v2328_v14  ;;  %1783 = vmatprep.subr.mxu0 %v453_v17 }
  0xab   : > { %1785 = vmatprep.mubr.msk.f32.mxu0 %vm462_vm0, %v2333_v15  ;;  %1784 = vmatpush3.msra.mxu0 %v453_v17 }
  0xb2   : > { %1786 = vmatmul.mubr.msk.f32.vlgmr.msra.gmra.mrb[0].mxu0 %vm462_vm0, %v2343_v18 }
  0xff   : > { %v1777_v19 = vpop.f32.mrb[0].mxu1 }
 0x100   : > { %v535_v20 = vpop.f32.mrb[1].mxu1 }
 0x181   : > { %716 = sbr.rel (%p713_p0) target bundleno = 392 (0x188), region = 52 }
 0x185   : > { %v1787_v21 = vpop.f32.mrb[0].mxu0 }
 0x186   : > { %v2350_v22 = vadd.f32 %v1787_v21, %v1777_v19  ;;  %v697_v23 = vpop.f32.mrb[1].mxu0 }
 0x187   : > { %v2352_v24 = vadd.f32 %v697_v23, %v535_v20 }
 0x188 PF: > { %p1711_p1 = scmp.ne.s32.totalorder %s2078_s29, 0 }
 0x189   : > { %726 = vadd.xlane.f32.xlu0 (!%p1711_p1), %v2352_v24  ;;  %v736_v26 = vmul.f32 (!%p1711_p1), %v2352_v24, %v2352_v24  ;;  %v737_v27 = vmul.f32 (!%p1711_p1), %v2350_v22, %v2350_v22  ;;  %v724_v28 = vld [vmem:[#allocation2] sm:$0xff] (!%p1711_p1)  ;;  %v734_v30 = vld [vmem:[#allocation3] sm:$0xff] (!%p1711_p1)  ;;  %v725_v33 = vld [vmem:[#allocation2 + $0x8] sm:$0xff] (!%p1711_p1) }
 0x18a   : > { %723 = sbr.rel (%p1711_p1) target bundleno = 544 (0x220), region = 56  ;;  %v735_v36 = vld [vmem:[#allocation3 + $0x8] sm:$0xff] (!%p1711_p1) }
 0x18b   : > { %738 = vadd.xlane.f32.xlu1 (!%p1711_p1), %v736_v26 }
 0x18d   : > { %728 = vadd.xlane.f32.xlu0 (!%p1711_p1), %v2350_v22 }
 0x18f   : > { %740 = vadd.xlane.f32.xlu1 (!%p1711_p1), %v737_v27 }
 0x216   : > { %v727_v29 = vpop.xlane.xlu0 %726 }
 0x217   : > { %v730_v31 = vadd.f32 %v727_v29, %v724_v28 }
 0x218   : > { %v739_v32 = vpop.xlane.xlu1 %738 }
 0x219   : > { %732 = vst.msk [vmem:[#allocation2] sm:$0xff] %vm443_vm3, %v730_v31  ;;  %v742_v34 = vadd.f32 %v739_v32, %v734_v30 }
 0x21a   : > { %v729_v35 = vpop.xlane.xlu0 %728 }
 0x21b   : > { %744 = vst.msk [vmem:[#allocation3] sm:$0xff] %vm443_vm3, %v742_v34  ;;  %v731_v37 = vadd.f32 %v729_v35, %v725_v33 }
 0x21c   : > { %v741_v38 = vpop.xlane.xlu1 %740 }
 0x21d   : > { %733 = vst.msk [vmem:[#allocation2 + $0x8] sm:$0xff] %vm443_vm3, %v731_v37  ;;  %v743_v39 = vadd.f32 %v741_v38, %v735_v36 }
 0x21f   : > { %745 = vst.msk [vmem:[#allocation3 + $0x8] sm:$0xff] %vm443_vm3, %v743_v39 }
 0x220 PF: > { %p1712_p2 = scmp.ne.s32.totalorder %s2078_s29, 1 }
 0x221   : > { %v1037_v40 = vld [vmem:[%s2314_s21] sm:$0xff] (!%p1712_p2)  ;;  %1805 = vmatprep.mubr.msk.f32.mxu1 (!%p1712_p2), %vm462_vm0, %v2283_v4  ;;  %1790 = vmatprep.mubr.msk.f32.mxu0 (!%p1712_p2), %vm462_vm0, %v2283_v4  ;;  %s2099_s23 = smov (!%p1712_p2), 127   ;;  %s2100_s17 = smov (!%p1712_p2), 2   ;;  %v2102_v51 = vmov (!%p1712_p2), 0   ;;  %v767_v59 = vld [vmem:[%s2536_s5 + $0x8] sm:$0xff] (!%p1712_p2)  ;;  %vm2104_vm5 = vmmov (!%p1712_p2), 0  }
 0x222   : > { %749 = sbr.rel (%p1712_p2) target bundleno = 1225 (0x4c9), region = 60  ;;  %v750_v41 = vld [vmem:[#allocation2] sm:$0xff] (!%p1712_p2)  ;;  %1189 = vrot.lane.b32.xlu0 (!%p1712_p2), %v1037_v40, %s2099_s23  ;;  %1803 = vmatprep.subr.mxu1 (!%p1712_p2), %v1037_v40  ;;  %v754_v44 = vld [vmem:[#allocation3] sm:$0xff] (!%p1712_p2)  ;;  %v771_v4 = vld [vmem:[%s2537_s6 + $0x8] sm:$0xff] (!%p1712_p2)  ;;  %vm1316_vm6 = vcmask (!%p1712_p2), 130048  }
 0x223   : > { %v802_v42 = vld [vmem:[%s2276_s15] sm:$0xff] (!%p1712_p2)  ;;  %v752_v43 = vmul.f32 (!%p1712_p2), 0.001953125, %v750_v41  ;;  %1804 = vmatpush3.msra.mxu1 (!%p1712_p2), %v1037_v40  ;;  %v756_v45 = vmul.f32 (!%p1712_p2), 0.001953125, %v754_v44  ;;  %s2101_s15 = smov (!%p1712_p2), 1   ;;  %1963 = vset.pattern.permute.xlu1 (!%p1712_p2), %v2102_v51 }
 0x224   : > { %882 = vrot.lane.b32.xlu1 (!%p1712_p2), %v802_v42, %s2100_s17  ;;  %v751_v46 = vld [vmem:[#allocation2 + $0x8] sm:$0xff] (!%p1712_p2)  ;;  %1806 = vmatmul.mubr.msk.f32.vlgmr.msra.gmra.mrb[0].mxu1 (!%p1712_p2), %vm462_vm0, %v2288_v5  ;;  %v766_v57 = vld [vmem:[%s2536_s5] sm:$0xff] (!%p1712_p2) }
 0x225   : > { %1808 = vmatprep.subr.mxu1 (!%p1712_p2), %v2321_v12  ;;  %v758_v48 = vmul.f32 (!%p1712_p2), %v752_v43, %v752_v43  ;;  %v753_v49 = vmul.f32 (!%p1712_p2), 0.001953125, %v751_v46  ;;  %1810 = vmatprep.mubr.msk.f32.mxu1 (!%p1712_p2), %vm462_vm0, %v2260_v2  ;;  %v770_v62 = vld [vmem:[%s2537_s6] sm:$0xff] (!%p1712_p2) }
 0x226   : > { %v755_v47 = vld [vmem:[#allocation3 + $0x8] sm:$0xff] (!%p1712_p2)  ;;  %1809 = vmatpush3.msra.mxu1 (!%p1712_p2), %v2321_v12  ;;  %804 = vrot.lane.b32.xlu0 (!%p1712_p2), %v802_v42, %s2101_s15 }
 0x227   : > { %v757_v50 = vmul.f32 (!%p1712_p2), 0.001953125, %v755_v47  ;;  %v760_v52 = vsub.f32 (!%p1712_p2), %v756_v45, %v758_v48  ;;  %v759_v53 = vmul.f32 (!%p1712_p2), %v753_v49, %v753_v49  ;;  %1964 = vset.pattern.permute.xlu0 (!%p1712_p2), %v2102_v51 }
 0x229   : > { %v762_v54 = vadd.f32 1e-05, %v760_v52  ;;  %v761_v55 = vsub.f32 %v757_v50, %v759_v53  ;;  %v1311_v52 = vld [vmem:[%s2535_s4] sm:$0xff] }
 0x22b   : > { %1980 = vrsqrt.f32 %v762_v54  ;;  %v763_v56 = vadd.f32 1e-05, %v761_v55 }
 0x22c   : > { %1811 = vmatmul.mubr.msk.f32.vlgmr.msra.gmra.mrb[0].mxu1 %vm462_vm0, %v2328_v14 }
 0x22d   : > { %1982 = vrsqrt.f32 %v763_v56  ;;  %1815 = vmatprep.mubr.msk.f32.mxu1 %vm462_vm0, %v2333_v15 }
 0x235   : > { %v1981_v58 = vpop.eup %1980 }
 0x236   : > { %v2395_v60 = vmul.f32 %v1981_v58, %v766_v57 }
 0x237   : > { %v1983_v61 = vpop.eup %1982 }
 0x238   : > { %778 = vperm.xlu1 %1963, %v2395_v60   ;;  %v772_v63 = vmul.f32 %v2395_v60, %v752_v43  ;;  %v2402_v1 = vmul.f32 %v1983_v61, %v767_v59  ;;  %v1726_v61 = vld [vmem:[%s2535_s4 + $0x10] sm:$0xff] }
 0x23a   : > { %v2407_v6 = vsub.f32 %v770_v62, %v772_v63  ;;  %783 = vperm.xlu0 %1964, %v2402_v1   ;;  %v773_v7 = vmul.f32 %v2402_v1, %v753_v49 }
 0x23c   : > { %790 = vperm.xlu1 %1963, %v2407_v6   ;;  %v2412_v9 = vsub.f32 %v771_v4, %v773_v7 }
 0x240   : > { %795 = vperm.xlu1 %1963, %v2412_v9  }
 0x294   : > { %v1190_v10 = vpop.permute.xlu0 %1189 }
 0x295   : > { %1813 = vmatprep.subr.mxu1 %v1190_v10 }
 0x296   : > { %1814 = vmatpush3.msra.mxu1 %v1190_v10  ;;  %v883_v12 = vpop.permute.xlu1 %882 }
 0x297   : > { %1816 = vmatmul.mubr.msk.f32.vlgmr.msra.gmra.mrb[0].mxu1 %vm462_vm0, %v2343_v18 }
 0x298   : > { %v805_v11 = vpop.permute.xlu0 %804 }
 0x299   : > { %1788 = vmatprep.subr.mxu0 %v805_v11 }
 0x29a   : > { %1789 = vmatpush3.msra.mxu0 %v805_v11 }
 0x29b   : > { %1791 = vmatmul.mubr.msk.f32.vlgmr.msra.gmra.mrb[0].mxu0 %vm462_vm0, %v2288_v5  ;;  %1793 = vmatprep.subr.mxu0 %v883_v12 }
 0x29c   : > { %1794 = vmatpush3.msra.mxu0 %v883_v12  ;;  %1795 = vmatprep.mubr.msk.f32.mxu0 %vm462_vm0, %v2260_v2 }
 0x29d   : > { %1798 = vmatprep.subr.mxu0 %v2248_v0 }
 0x2a3   : > { %1796 = vmatmul.mubr.msk.f32.vlgmr.msra.gmra.mrb[0].mxu0 %vm462_vm0, %v2328_v14 }
 0x2a4   : > { %1799 = vmatpush3.msra.mxu0 %v2248_v0  ;;  %1800 = vmatprep.mubr.msk.f32.mxu0 %vm462_vm0, %v2333_v15  ;;  %v2103_v15 = vmov 0.0|0.0  }
 0x2a5   : > { %1839 = vmatprep.subr.bf16.mxu0 %v2103_v15  ;;  %1842 = vmatprep.subr.bf16.mxu1 %v2103_v15 }
 0x2ab   : > { %1801 = vmatmul.mubr.msk.f32.vlgmr.msra.gmra.mrb[0].mxu0 %vm462_vm0, %v2343_v18 }
 0x2b7   : > { %v779_v13 = vpop.permute.xlu1 %778 }
 0x2b8   : > { %v786_v5 = vmul.f32 %v2352_v24, %v779_v13  ;;  %v2105_v24 = vmov 0.0  }
 0x2b9   : > { %v784_v16 = vpop.permute.xlu0 %783  ;;  %1822 = vmatprep.mubr.msk.f32.mxu0 %vm2104_vm5, %v2105_v24  ;;  %1829 = vmatprep.mubr.msk.f32.mxu1 %vm2104_vm5, %v2105_v24 }
 0x2ba   : > { %v787_v2 = vmul.f32 %v2350_v22, %v784_v16  ;;  %v1725_v22 = vld [vmem:[%s2535_s4 + $0x8] sm:$0xff] }
 0x2bb   : > { %v791_v17 = vpop.permute.xlu1 %790 }
 0x2bc   : > { %v798_v19 = vadd.f32 %v791_v17, %v786_v5 }
 0x2be   : > { %v800_v21 = vmax.f32 %v798_v19, 0.0 }
 0x2bf   : > { %v796_v20 = vpop.permute.xlu1 %795 }
 0x2c0   : > { %v799_v23 = vadd.f32 %v796_v20, %v787_v2 }
 0x2c2   : > { %v801_v14 = vmax.f32 %v799_v23, 0.0 }
 0x2c4   : > { %v1965_v25 = vpack.i.bf16 %v801_v14, %v800_v21  ;;  %v1840_v26 = vpack.c.bf16 %v801_v14, %v800_v21 }
 0x2c6   : > { %1966 = vrot.lane.b32.xlu0 %v1965_v25, %s2101_s15  ;;  %1971 = vrot.lane.b32.xlu1 %v1965_v25, %s2099_s23 }
 0x2c7   : > { %1841 = vmatpush3.bf16.msra.mxu0 %v1840_v26 }
 0x2c8   : > { %1845 = vmatprep.subr.bf16.mxu0 %v2103_v15 }
 0x2ca   : > { %1823 = vmatmul.mubr.msk.f32.vlgmr.msra.gmra.mrb[2].mxu0 %vm1316_vm6, %v1725_v22 }
 0x2cb   : > { %1836 = vmatprep.mubr.msk.f32.mxu0 %vm2104_vm5, %v2105_v24 }
 0x338   : > { %v1967_v40 = vpop.permute.xlu0 %1966  ;;  %v1972_v53 = vpop.permute.xlu1 %1971 }
 0x339   : > { %v1969_v44 = vunpack.i.h.bf16 %v1967_v40  ;;  %v1968_v46 = vunpack.i.l.bf16 %v1967_v40  ;;  %v1974_v55 = vunpack.i.h.bf16 %v1972_v53  ;;  %v1973_v56 = vunpack.i.l.bf16 %v1972_v53 }
 0x36a   : > { %v1817_v18 = vpop.f32.mrb[0].mxu1 }
 0x36b   : > { %v1278_v27 = vmul.f32 %v1817_v18, %v2402_v1  ;;  %v1258_v28 = vpop.f32.mrb[1].mxu1 }
 0x36c   : > { %v1277_v29 = vmul.f32 %v1258_v28, %v2395_v60 }
 0x36d   : > { %v1280_v30 = vadd.f32 %v1278_v27, %v2412_v9 }
 0x36e   : > { %v1279_v31 = vadd.f32 %v1277_v29, %v2407_v6 }
 0x36f   : > { %v1282_v32 = vmax.f32 %v1280_v30, 0.0 }
 0x370   : > { %v1281_v33 = vmax.f32 %v1279_v31, 0.0 }
 0x371   : > { %v1284_v34 = vsel %vm2303_vm2, %v1282_v32, 0.0 }
 0x372   : > { %v1283_v35 = vsel %vm2303_vm2, %v1281_v33, 0.0 }
 0x373   : > { %v1975_v36 = vpack.i.bf16 %v1284_v34, %v1283_v35 }
 0x375   : > { %1976 = vrot.lane.b32.xlu0 %v1975_v36, %s2099_s23 }
 0x37e   : > { %v1802_v37 = vpop.f32.mrb[0].mxu0 }
 0x37f   : > { %v1270_v38 = vmul.f32 %v1802_v37, %v2402_v1  ;;  %v1026_v39 = vpop.f32.mrb[1].mxu0 }
 0x380   : > { %v1269_v41 = vmul.f32 %v1026_v39, %v2395_v60 }
 0x381   : > { %v1272_v42 = vadd.f32 %v1270_v38, %v2412_v9 }
 0x382   : > { %v1271_v43 = vadd.f32 %v1269_v41, %v2407_v6 }
 0x383   : > { %v1274_v45 = vmax.f32 %v1272_v42, 0.0 }
 0x384   : > { %v1273_v47 = vmax.f32 %v1271_v43, 0.0 }
 0x385   : > { %v1276_v8 = vsel %vm2263_vm1, %v1274_v45, 0.0 }
 0x386   : > { %v1275_v48 = vsel %vm2263_vm1, %v1273_v47, 0.0  ;;  %v1294_v49 = vsel %vm443_vm3, %v1276_v8, %v1969_v44 }
 0x387   : > { %v1293_v50 = vsel %vm443_vm3, %v1275_v48, %v1968_v46 }
 0x388   : > { %v1843_v51 = vpack.c.bf16 %v1294_v49, %v1293_v50 }
 0x38a   : > { %1844 = vmatpush3.bf16.msra.mxu1 %v1843_v51 }
 0x38d   : > { %1830 = vmatmul.mubr.msk.f32.vlgmr.msra.gmra.mrb[2].mxu1 %vm1316_vm6, %v1311_v52 }
 0x39d   : > { %v1386_v62 = vpop.f32.mrb[2].mxu0 }
 0x39e   : > { %v1824_v63 = vpop.f32.mrb[3].mxu0 }
 0x3e7   : > { %v1977_v54 = vpop.permute.xlu0 %1976 }
 0x3e8   : > { %v1979_v57 = vunpack.i.h.bf16 %v1977_v54  ;;  %v1978_v58 = vunpack.i.l.bf16 %v1977_v54 }
 0x3ea   : > { %v1310_v3 = vsel %vm452_vm4, %v1974_v55, %v1979_v57  ;;  %v1309_v59 = vsel %vm452_vm4, %v1973_v56, %v1978_v58 }
 0x3eb   : > { %v1846_v60 = vpack.c.bf16 %v1310_v3, %v1309_v59 }
 0x3ed   : > { %1847 = vmatpush3.bf16.msra.mxu0 %v1846_v60 }
 0x3f0   : > { %1837 = vmatmul.mubr.msk.f32.vlgmr.msra.gmra.mrb[4].mxu0 %vm1316_vm6, %v1726_v61 }
 0x460   : > { %v1459_v1 = vpop.f32.mrb[2].mxu1 }
 0x461   : > { %v1460_v4 = vadd.f32 %v1459_v1, %v1386_v62  ;;  %v1831_v6 = vpop.f32.mrb[3].mxu1 }
 0x4c3   : > { %v1532_v7 = vpop.f32.mrb[4].mxu0 }
 0x4c4   : > { %v1536_v9 = vadd.f32 %v1532_v7, %v1460_v4  ;;  %v1838_v10 = vpop.f32.mrb[5].mxu0 }
 0x4c6   : > { %v1537_v11 = vadd.f32 %v1536_v9, %v2248_v0 }
 0x4c8   : > { %1538 = vst [vmem:[%s382_s20] sm:$0xff] %v1537_v11 }
 0x4c9 PF: > { %p1547_p3 = scmp.eq.s32.totalorder %s2078_s29, 1  ;;  %s1558_s13 = sshll.u32 %s382_s20, 4  ;;  %s2474_s13 = int_to_ptr.vmem [resolvable:$true] %s1558_s13 }
 0x4ca   : > { %s1540_s15 = scalar_lea.sflag [#allocation5], %s380_s8  ;;  %s1984_s22 = scalar_lea.vmem %s2474_s13, 128 }
 0x4cb   : > { %s2590_s28 = smov (!%p1547_p3, %s2074_s28), 0  ;;  %s2592_s27 = smov (!%p1547_p3, %s2070_s27), 0 }
 0x4cc   : > { %s1731_s11 = sshll.u32 %s2590_s28, 1  ;;  %p1985_p4 = scmp.ne.s32.totalorder %s2474_s13, %s1984_s22 }
 0x4cd   : > { %s1554_s14 = sadd.s32 %s1731_s11, %s2592_s27  ;;  %s2106_s29 = smov [#allocation4]  }
 0x4ce   : > { %s1732_s17 = sshll.u32 %s1554_s14, 7  ;;  %p1986_p5 = pnand %p1985_p4, %p2215_p8 }
 0x4cf   : > { %s1556_s23 = scalar_lea.hbm %s2538_s7, %s1732_s17  ;;  %s1988_s28 = sshll.u32 %s2106_s29, 4  ;;  %s1989_s28 = int_to_ptr.vmem [resolvable:$false] %s1988_s28 }
 0x4d0   : > { %p1987_p6 = pneg %p1986_p5  ;;  %s1990_s27 = scalar_lea.vmem %s1989_s28, 256 }
 0x4d1   : > { %p1991_p7 = scmp.lt.s32.totalorder %s2474_s13, %s1989_s28  ;;  %p1992_p9 = scmp.lt.s32.totalorder %s1990_s27, %s1984_s22 }
 0x4d3   : > { %p1993_p11 = por %p1992_p9, %p1991_p7 }
 0x4d5   : > { %p1994_p12 = pnand %p1993_p11, %p1987_p6 }
 0x4d7   : > { %1997 = shalt.err (!%p1994_p12)
}
 0x4d8   : > { %s1998_s12 = scalar_lea.hbm %s1556_s23, 128  ;;  %s2002_s1 = scalar_lea.hbm %s2538_s7, 512 }
 0x4d9   : > { %p1999_p13 = scmp.ne.s32.totalorder %s1556_s23, %s1998_s12  ;;  %p2003_p2 = scmp.lt.u32.totalorder %s1556_s23, %s2538_s7 }
 0x4da   : > { %p2004_p3 = scmp.lt.u32.totalorder %s2002_s1, %s1998_s12  ;;  %p2006_p5 = scmp.lt.u32.totalorder %s1998_s12, %s1556_s23 }
 0x4db   : > { %p2000_p0 = pnand %p1999_p13, %p2215_p8 }
 0x4dc   : > { %p2005_p4 = por %p2004_p3, %p2003_p2 }
 0x4dd   : > { %p2001_p1 = pneg %p2000_p0 }
 0x4de   : > { %p2007_p7 = por %p2006_p5, %p2005_p4 }
 0x4e0   : > { %p2008_p6 = pnand %p2007_p7, %p2001_p1 }
 0x4e2   : > { %2011 = shalt.err (!%p2008_p6)
}
 0x4e3   : > { %1860 = dma.vmem_to_hbm [thread:$0]  (%p2215_p8), %s2474_s13, 128, %s1556_s23, %s1540_s15  }
 0x4e4 PF: > { %p1866_p9 = scmp.ge.s32.totalorder %s2094_s10, 2  ;;  %s1570_s17 = sand.u32 1, %s2058_s24  }
 0x4e5   : > { %s1571_s21 = scalar_lea.sflag [#allocation5], %s1570_s17 }
 0x4e6   : > { %p1863_p11 = pnand %p1866_p9, %p2222_p10 }
 0x4e8   : > { %2053 = dma.done.wait (!%p1863_p11), %s1571_s21, 128  }
 0x4e9   : > { %2055 = vsyncadd (!%p1863_p11), %s1571_s21, 4294967168  ;;  %s20_s10 = sadd.s32 1, %s2094_s10   ;;  %s2560_s28 = sld [smem:[#allocation7_spill]] }
 0x4ea   : > { %p17_p12 = scmp.ge.s32.totalorder %s20_s10, 10   ;;  %s2561_s29 = sld [smem:[#allocation8_spill]] }
 0x4eb   : > { %s2562_s18 = sld [smem:[#allocation9_spill]]  ;;  %s2563_s8 = sld [smem:[#allocation10_spill]] }
 0x4ec   : > { %s2564_s13 = sld [smem:[#allocation11_spill]]  ;;  %s2565_s24 = smov %s2062_s25 }
 0x4ed   : > { %s2566_s25 = smov %s2066_s26  ;;  %s2567_s26 = smov %s2232_s9 }
 0x4ee   : > { %s2568_s27 = smov %s2082_s30  ;;  %19 = sbr.rel (!%p17_p12) target bundleno = 8 (0x8), region = 105 }
 0x4f1   : > { %s2569_s30 = smov %s2562_s18 }
 0x4f2   : > { %s2570_s9 = smov %s2564_s13 }
 0x4f5   :  { %1576 = vsyncpa [#allocation5], 1 }
 0x4f6   :  { %1578 = vsyncpa [#allocation5 + $0x1], 1 }

</bundles_post_ra>
